<compile_context>
chip_gen: v7x
topology: tpu7x:2x2x1
jax: 0.10.0
libtpu: 0.0.40
codegen_flags: <defaults>
</compile_context>

<pallas_src>
import functools

import jax
import jax.numpy as jnp
from jax.experimental import pallas as pl
from jax.experimental.pallas import tpu as pltpu

NEG_SLOPE = 0.01  # torch.nn.LeakyReLU default


def _leaky_relu(v):
    return jnp.where(v > 0, v, NEG_SLOPE * v)


def se_kernel(x_ref, w1t_ref, w2t_ref, o_ref, *, inv_hw):
    # x_ref  : (Nb, C, HWp)  batch tile, storage dtype (padded lanes are zero)
    # w1t_ref: (C, Cmid)     first 1x1 conv weight, pre-transposed, f32
    # w2t_ref: (Cmid, C)     second 1x1 conv weight, pre-transposed, f32
    # o_ref  : (Nb, C, HWp)
    x = x_ref[...]                                            # storage dtype

    # AdaptiveAvgPool2d(1): accumulate in f32, divide by the true HW
    # (zero padding contributes nothing to the sum).
    pool = jnp.sum(x, axis=2, dtype=jnp.float32) * inv_hw     # (Nb, C) f32

    # Tiny SE MLP, batched over the Nb samples of this tile (f32).
    h = _leaky_relu(jnp.dot(pool, w1t_ref[...],
                            preferred_element_type=jnp.float32))   # (Nb, Cmid)
    s = _leaky_relu(jnp.dot(h, w2t_ref[...],
                            preferred_element_type=jnp.float32))   # (Nb, C)

    # Gate in the storage dtype; broadcast the per-(n,c) scale over HW.
    o_ref[...] = (x * s.astype(x.dtype)[:, :, None]).astype(o_ref.dtype)


def _pick_batch_tile(N, C, HWp, itemsize, budget_bytes):
    """Largest divisor of N whose double-buffered in+out blocks fit the budget,
    while keeping >= 2 grid steps when possible (megacore on v7x)."""
    bytes_per_sample = 4 * C * HWp * itemsize          # in + out, double-buffered
    max_nb = max(1, budget_bytes // bytes_per_sample)
    target = 1 if N < 2 else min(max_nb, max(1, N // 2))
    nb = 1
    for d in range(1, N + 1):
        if N % d == 0 and d <= target:
            nb = d
    return nb


def se_module(x_nchw, w1, w2, *, vmem_block_budget_bytes=24 * 1024 * 1024):
    """x_nchw: (N, C, H, W); w1: (Cmid, C); w2: (C, Cmid) (1x1 conv weights)."""
    N, C, H, W = x_nchw.shape
    Cmid = w1.shape[0]
    HW = H * W
    itemsize = jnp.dtype(x_nchw.dtype).itemsize

    # Lane-dense spatial axis: pad HW up to a multiple of 128.
    HWp = max(128, ((HW + 127) // 128) * 128)
    x_flat = x_nchw.reshape(N, C, HW)
    if HWp != HW:
        x_flat = jnp.pad(x_flat, ((0, 0), (0, 0), (0, HWp - HW)))

    nb = _pick_batch_tile(N, C, HWp, itemsize, vmem_block_budget_bytes)
    grid = (N // nb,)

    # Hoist weight casts / transposes out of the kernel (they stay resident).
    w1t = w1.astype(jnp.float32).T      # (C, Cmid)
    w2t = w2.astype(jnp.float32).T      # (Cmid, C)

    kernel = functools.partial(se_kernel, inv_hw=1.0 / HW)

    out_flat = pl.pallas_call(
        kernel,
        out_shape=jax.ShapeDtypeStruct((N, C, HWp), x_nchw.dtype),
        grid_spec=pltpu.PrefetchScalarGridSpec(
            num_scalar_prefetch=0,
            grid=grid,
            in_specs=[
                pl.BlockSpec((nb, C, HWp), lambda n: (n, 0, 0)),
                pl.BlockSpec((C, Cmid), lambda n: (0, 0)),
                pl.BlockSpec((Cmid, C), lambda n: (0, 0)),
            ],
            out_specs=pl.BlockSpec((nb, C, HWp), lambda n: (n, 0, 0)),
        ),
        compiler_params=pltpu.CompilerParams(
            dimension_semantics=("parallel",)),
        cost_estimate=pl.CostEstimate(
            flops=4 * N * C * Cmid + N * C * HWp,
            transcendentals=0,
            bytes_accessed=2 * N * C * HWp * itemsize),
    )(x_flat, w1t, w2t)

    out = out_flat[:, :, :HW] if HWp != HW else out_flat
    return out.reshape(N, C, H, W)


def se_module_ref(x_nchw, w1, w2):
    """Pure-JAX reference matching the PyTorch forward."""
    pool = jnp.mean(x_nchw.astype(jnp.float32), axis=(2, 3))          # (N, C)
    h = _leaky_relu(pool @ w1.astype(jnp.float32).T)                  # (N, Cmid)
    s = _leaky_relu(h @ w2.astype(jnp.float32).T)                     # (N, C)
    return (x_nchw.astype(jnp.float32) * s[:, :, None, None]).astype(x_nchw.dtype)


if __name__ == "__main__":
    # Small shapes consistent with the module: in_size=4, reduction=1.
    N, C, H, W = 2, 4, 16, 16
    reduction = 1
    Cmid = C // reduction

    key = jax.random.PRNGKey(0)
    kx, k1, k2 = jax.random.split(key, 3)
    x = jax.random.normal(kx, (N, C, H, W), dtype=jnp.float32)
    # Conv2d weights of shape (out, in, 1, 1), squeezed to (out, in).
    w1 = jax.random.normal(k1, (Cmid, C), dtype=jnp.float32) * 0.1
    w2 = jax.random.normal(k2, (C, Cmid), dtype=jnp.float32) * 0.1

    out = jax.block_until_ready(se_module(x, w1, w2))
    ref = se_module_ref(x, w1, w2)
    assert out.shape == (N, C, H, W)
    assert jnp.allclose(out, ref, atol=1e-5, rtol=1e-5), "mismatch vs reference"
    print("KERNEL_OK")
</pallas_src>

<mosaic_0001>
module attributes {stable_mosaic.version = 11 : i64} {
  func.func @se_kernel(%arg0: i32, %arg1: memref<1x4x256xf32, #tpu.memory_space<vmem>>, %arg2: memref<4x4xf32, #tpu.memory_space<vmem>>, %arg3: memref<4x4xf32, #tpu.memory_space<vmem>>, %arg4: memref<1x4x256xf32, #tpu.memory_space<vmem>>) attributes {dimension_semantics = [#tpu.dimension_semantics<parallel>], iteration_bounds = array<i64: 2>, scalar_prefetch = 0 : i64, scratch_operands = 0 : i64, tpu.core_type = #tpu.core_type<tc>, window_params = [{transform_indices = @transform_0, window_bounds = array<i64: 1, 4, 256>}, {pipeline_mode = #tpu.pipeline_mode<synchronous>, transform_indices = @transform_1, window_bounds = array<i64: 4, 4>}, {pipeline_mode = #tpu.pipeline_mode<synchronous>, transform_indices = @transform_2, window_bounds = array<i64: 4, 4>}, {transform_indices = @transform_3, window_bounds = array<i64: 1, 4, 256>}]} {
    %c0 = arith.constant 0 : index
    %c0_0 = arith.constant 0 : index
    %c0_1 = arith.constant 0 : index
    %0 = vector.load %arg1[%c0, %c0_0, %c0_1] : memref<1x4x256xf32, #tpu.memory_space<vmem>>, vector<1x4x256xf32>
    %cst = arith.constant dense<0.000000e+00> : vector<1x4xf32>
    %1 = vector.multi_reduction <add>, %0, %cst [2] : vector<1x4x256xf32> to vector<1x4xf32>
    %cst_2 = arith.constant 3.906250e-03 : f32
    %2 = vector.broadcast %cst_2 : f32 to vector<1x4xf32>
    %3 = arith.mulf %1, %2 : vector<1x4xf32>
    %c0_3 = arith.constant 0 : index
    %c0_4 = arith.constant 0 : index
    %4 = vector.load %arg2[%c0_3, %c0_4] : memref<4x4xf32, #tpu.memory_space<vmem>>, vector<4x4xf32>
    %cst_5 = arith.constant dense<0.000000e+00> : vector<1x4xf32>
    %5 = tpu.matmul %3, %4, %cst_5 {dimension_numbers = #tpu.dot_dimension_numbers<[1], [0], [0], [1], [0, 0, 1, 1], [], []>} : vector<1x4xf32>, vector<4x4xf32>, vector<1x4xf32> -> vector<1x4xf32>
    %cst_6 = arith.constant 0.000000e+00 : f32
    %6 = vector.broadcast %cst_6 : f32 to vector<1x4xf32>
    %7 = arith.cmpf ogt, %5, %6 : vector<1x4xf32>
    %cst_7 = arith.constant 0.00999999977 : f32
    %8 = vector.broadcast %cst_7 : f32 to vector<1x4xf32>
    %9 = arith.mulf %8, %5 : vector<1x4xf32>
    %10 = arith.select %7, %5, %9 : vector<1x4xi1>, vector<1x4xf32>
    %c0_8 = arith.constant 0 : index
    %c0_9 = arith.constant 0 : index
    %11 = vector.load %arg3[%c0_8, %c0_9] : memref<4x4xf32, #tpu.memory_space<vmem>>, vector<4x4xf32>
    %cst_10 = arith.constant dense<0.000000e+00> : vector<1x4xf32>
    %12 = tpu.matmul %10, %11, %cst_10 {dimension_numbers = #tpu.dot_dimension_numbers<[1], [0], [0], [1], [0, 0, 1, 1], [], []>} : vector<1x4xf32>, vector<4x4xf32>, vector<1x4xf32> -> vector<1x4xf32>
    %cst_11 = arith.constant 0.000000e+00 : f32
    %13 = vector.broadcast %cst_11 : f32 to vector<1x4xf32>
    %14 = arith.cmpf ogt, %12, %13 : vector<1x4xf32>
    %cst_12 = arith.constant 0.00999999977 : f32
    %15 = vector.broadcast %cst_12 : f32 to vector<1x4xf32>
    %16 = arith.mulf %15, %12 : vector<1x4xf32>
    %17 = arith.select %14, %12, %16 : vector<1x4xi1>, vector<1x4xf32>
    %18 = vector.shape_cast %17 : vector<1x4xf32> to vector<1x4x1xf32>
    %19 = vector.broadcast %18 : vector<1x4x1xf32> to vector<1x4x256xf32>
    %20 = arith.mulf %0, %19 : vector<1x4x256xf32>
    %c0_13 = arith.constant 0 : index
    %c0_14 = arith.constant 0 : index
    %c0_15 = arith.constant 0 : index
    %21 = vector.load %arg4[%c0_13, %c0_14, %c0_15] : memref<1x4x256xf32, #tpu.memory_space<vmem>>, vector<1x4x256xf32>
    tpu.vector_store %arg4[%c0_13, %c0_14, %c0_15], %20 {strides = array<i32>} : memref<1x4x256xf32, #tpu.memory_space<vmem>>, vector<1x4x256xf32>,
    return
  }
  func.func @transform_0(%arg0: i32) -> (i32, i32, i32) {
    %c0_i32 = arith.constant 0 : i32
    %c0_i32_0 = arith.constant 0 : i32
    %c0_i32_1 = arith.constant 0 : i32
    return %arg0, %c0_i32, %c0_i32_0 : i32, i32, i32
  }
  func.func @transform_1(%arg0: i32) -> (i32, i32) {
    %c0_i32 = arith.constant 0 : i32
    %c0_i32_0 = arith.constant 0 : i32
    %c0_i32_1 = arith.constant 0 : i32
    return %c0_i32, %c0_i32_0 : i32, i32
  }
  func.func @transform_2(%arg0: i32) -> (i32, i32) {
    %c0_i32 = arith.constant 0 : i32
    %c0_i32_0 = arith.constant 0 : i32
    %c0_i32_1 = arith.constant 0 : i32
    return %c0_i32, %c0_i32_0 : i32, i32
  }
  func.func @transform_3(%arg0: i32) -> (i32, i32, i32) {
    %c0_i32 = arith.constant 0 : i32
    %c0_i32_0 = arith.constant 0 : i32
    %c0_i32_1 = arith.constant 0 : i32
    return %arg0, %c0_i32, %c0_i32_0 : i32, i32, i32
  }
}

</mosaic_0001>

<bundles_post_ra>
// kernel: tpu_custom_call.1
= control target key start
LH: loop header
LB: loop body
LE: loop exit
PB: predicated region body
PF: predicated region fallthrough
CT: control target
= control target key end

     0   :  { %8 = vsyncpa [#allocation3], 0  ;;  %s956_s0 = inlined_call_operand.hbm [shape: f32[2,4,256], index: 0, kind: input, shape index: {}]   ;;  %s957_s1 = inlined_call_operand.hbm [shape: f32[4,4], index: 1, kind: input, shape index: {}]   ;;  %s958_s2 = inlined_call_operand.vmem [shape: f32[4,4], index: 2, kind: input, shape index: {}]   ;;  %s959_s3 = inlined_call_operand.hbm [shape: f32[2,4,256], index: 3, kind: output, shape index: {}]  }
   0x1   :  { %10 = vsyncpa [#allocation3 + $0x1], 0 }
   0x2   :  { %11 = vsyncpa [#allocation6], 0 }
   0x3   :  { %12 = vsyncpa [#allocation4], 0 }
   0x4   :  { %14 = vsyncpa [#allocation4 + $0x1], 0  ;;  %s744_s12 = smov 0   ;;  %s746_s13 = smov 0  }
   0x5   :  { %s748_s14 = smov 0   ;;  %s750_s15 = smov 0  }
   0x6 LB: > { %s765_s16 = sadd.s32 4294967295, %s716_s15   ;;  %s491_s17 = sadd.s32 4294967294, %s716_s15   ;;  %s716_s15 = sphi %s750_s15, %s983_s15   ;;  %s712_s14 = sphi %s748_s14, %s982_s14   ;;  %s708_s13 = sphi %s746_s13, %s981_s13   ;;  %s704_s12 = sphi %s744_s12, %s980_s12  }
   0x7   : > { %p40_p0 = scmp.ne.s32.totalorder %s708_s13, %s704_s12  ;;  %p960_p1 = scmp.eq.s32.totalorder %s765_s16, 0 }
   0x8   : > { %p112_p3 = scmp.eq.s32.totalorder %s491_s17, 1  ;;  %p492_p5 = scmp.ge.s32.totalorder %s716_s15, 1 }
   0x9   : > { %p774_p4 = por %p960_p1, %p40_p0  ;;  %p119_p7 = scmp.lt.s32.totalorder %s716_s15, 3 }
   0xa   : > { %p779_p6 = por %p112_p3, %p40_p0  ;;  %s718_s21 = smov [#allocation5]  }
   0xb   : > { %s963_s18 = scalar_select %p774_p4, 1, 0 }
   0xc   : > { %s964_s19 = scalar_select %p779_p6, 1, 0 }
   0xd   : > { %p784_p8 = pnand %p492_p5, %p119_p7  ;;  %s132_s22 = sshll.u32 %s718_s21, 4  ;;  %s133_s22 = int_to_ptr.vmem [resolvable:$true] %s132_s22 }
   0xe   : > { %s792_s23 = sadd.s32 1, %s716_s15   ;;  %s27_s27 = sadd.s32 1, %s712_s14 }
   0xf   : > { %s965_s20 = scalar_select %p784_p8, 1, 0 }
  0x10   : > { %p535_p10 = pneg %p784_p8  ;;  %s24_s25 = ssub.s32 %s716_s15, %s792_s23 }
  0x11   : > { %p802_p12 = scmp.eq.s32.totalorder %s24_s25, 0  ;;  %s588_s30 = scalar_lea.hbm %s957_s1, 64 }
  0x12   : > { %p796_p11 = pnand %p535_p10, %p960_p1  ;;  %p589_p0 = scmp.ne.s32.totalorder %s957_s1, %s588_s30 }
  0x13   : > { %s967_s26 = scalar_select %p802_p12, 1, 0 }
  0x14   : > { %p590_p3 = pneg %p796_p11  ;;  %p595_p10 = scmp.lt.u32.totalorder %s588_s30, %s957_s1 }
  0x16   : > { %p591_p5 = pnand %p590_p3, %p589_p0 }
  0x18   : > { %p592_p7 = pneg %p591_p5 }
  0x1a   : > { %p597_p9 = pnand %p595_p10, %p592_p7 }
  0x1c   : > { %600 = shalt.err (!%p597_p9)
}
  0x1d   : > { %s601_s8 = scalar_lea.vmem %s133_s22, 64  ;;  %p609_p6 = scmp.lt.s32.totalorder %s133_s22, %s133_s22 }
  0x1e   : > { %p602_p1 = scmp.ne.s32.totalorder %s133_s22, %s601_s8  ;;  %p610_p4 = scmp.lt.s32.totalorder %s601_s8, %s601_s8 }
  0x20   : > { %p604_p2 = pnand %p602_p1, %p590_p3  ;;  %p611_p8 = por %p610_p4, %p609_p6 }
  0x22   : > { %p605_p13 = pneg %p604_p2 }
  0x24   : > { %p612_p12 = pnand %p611_p8, %p605_p13 }
  0x26   : > { %615 = shalt.err (!%p612_p12)
}
  0x27   : > { %538 = dma.hbm_to_vmem [thread:$0]  (!%p796_p11), %s957_s1, 64, %s133_s22, [#allocation6]  }
  0x28   : > { %p968_p1 = scmp.ne.s32.totalorder %s967_s26, 0  ;;  %p35_p2 = scmp.eq.s32.totalorder %s716_s15, 0 }
  0x29   : > { %p969_p4 = scmp.ne.s32.totalorder %s712_s14, %s708_s13  ;;  %p970_p6 = scmp.eq.s32.totalorder %s765_s16, 1 }
  0x2a   : > { %s828_s11 = scalar_select %p968_p1, %s712_s14, %s27_s27  }
  0x2b   : > { %p836_p8 = por %p970_p6, %p969_p4  ;;  %p548_p9 = scmp.lt.s32.totalorder %s716_s15, 2 }
  0x2c   : > { %s146_s21 = sand.u32 1, %s712_s14   ;;  %p972_p12 = pmov %p969_p4 }
  0x2d   : > { %s495_s24 = sshll.u32 %s146_s21, 3  ;;  %s511_s25 = sshll.u32 %s716_s15, 7 }
  0x2e   : > { %p36_p13 = por %p35_p2, %p972_p12  ;;  %s849_s22 = scalar_lea.hbm %s956_s0, %s511_s25 }
  0x2f   : > { %s150_s26 = scalar_lea.vmem [#allocation2], %s495_s24  ;;  %s147_s4 = scalar_lea.sflag [#allocation3], %s146_s21 }
  0x30   : > { %s158_s27 = sshll.u32 %s150_s26, 4  ;;  %p851_p11 = pnand %p548_p9, %p36_p13  ;;  %s855_s27 = int_to_ptr.vmem [resolvable:$true] %s158_s27 }
  0x31   : > { %s616_s5 = scalar_lea.hbm %s849_s22, 128  ;;  %s621_s8 = scalar_lea.hbm %s956_s0, 256 }
  0x32   : > { %p617_p0 = scmp.ne.s32.totalorder %s849_s22, %s616_s5  ;;  %p618_p3 = pneg %p851_p11 }
  0x33   : > { %p622_p10 = scmp.lt.u32.totalorder %s849_s22, %s956_s0  ;;  %p623_p1 = scmp.lt.u32.totalorder %s621_s8, %s616_s5 }
  0x34   : > { %p619_p5 = pnand %p618_p3, %p617_p0  ;;  %p625_p4 = scmp.lt.u32.totalorder %s616_s5, %s849_s22 }
  0x35   : > { %p624_p2 = por %p623_p1, %p622_p10 }
  0x36   : > { %p620_p7 = pneg %p619_p5 }
  0x37   : > { %p626_p6 = por %p625_p4, %p624_p2 }
  0x39   : > { %p627_p9 = pnand %p626_p6, %p620_p7 }
  0x3b   : > { %630 = shalt.err (!%p627_p9)
}
  0x3c   : > { %s631_s21 = scalar_lea.vmem %s855_s27, 128  ;;  %s719_s24 = smov [#allocation2]  }
  0x3d   : > { %p632_p12 = scmp.ne.s32.totalorder %s855_s27, %s631_s21  ;;  %s636_s25 = sshll.u32 %s719_s24, 4  ;;  %s637_s25 = int_to_ptr.vmem [resolvable:$false] %s636_s25 }
  0x3e   : > { %s638_s28 = scalar_lea.vmem %s637_s25, 256  ;;  %p639_p5 = scmp.lt.s32.totalorder %s855_s27, %s637_s25 }
  0x3f   : > { %p634_p13 = pnand %p632_p12, %p618_p3  ;;  %p640_p10 = scmp.lt.s32.totalorder %s638_s28, %s631_s21 }
  0x41   : > { %p635_p0 = pneg %p634_p13  ;;  %p641_p1 = por %p640_p10, %p639_p5 }
  0x43   : > { %p642_p2 = pnand %p641_p1, %p635_p0 }
  0x45   : > { %645 = shalt.err (!%p642_p2)
}
  0x46   : > { %542 = dma.hbm_to_vmem [thread:$0]  (!%p851_p11), %s849_s22, 128, %s855_s27, %s147_s4  }
  0x47   : > { %p974_p7 = scmp.ne.s32.totalorder %s965_s20, 0 }
  0x48   : > { %s885_s29 = sand.u32 (!%p974_p7), 1, %s708_s13   ;;  %p975_p3 = scmp.ne.s32.totalorder (!%p974_p7), %s963_s18, 0 }
  0x49   : > { %167 = sbr.rel (%p974_p7) target bundleno = 801 (0x321), region = 32  ;;  %s499_s26 = sshll.u32 (!%p974_p7), %s885_s29, 3 }
  0x4a   : > { %s170_s5 = scalar_lea.sflag (!%p974_p7), [#allocation3], %s885_s29  ;;  %s173_s6 = scalar_lea.vmem (!%p974_p7), [#allocation2], %s499_s26 }
  0x50   : > { %691 = dma.done.wait (%p975_p3), %s170_s5, 128  }
  0x51   : > { %693 = vsyncadd (%p975_p3), %s170_s5, 4294967168  ;;  %p976_p11 = scmp.eq.s32.totalorder %s765_s16, 0 }
  0x53   : > { %695 = dma.done.wait (%p976_p11), [#allocation6], 64   ;;  %p977_p4 = pmov %p976_p11 }
  0x54   : > { %vm204_vm0 = vcmask 1043456   ;;  %v200_v0 = vld [vmem:[%s173_s6] sm:$0xff]  ;;  %v720_v5 = vmov 0.0   ;;  %v211_v6 = vld [vmem:[#allocation5] sm:$0xf]  ;;  %vm721_vm1 = vmmov 0   ;;  %v213_v7 = vlaneseq }
  0x55   : > { %697 = vsyncadd (%p977_p4), [#allocation6], 4294967232  ;;  %v202_v1 = vcombine.high %v200_v0, %v200_v0  ;;  %v205_v2 = vsel %vm204_vm0, %v200_v0, 0.0  ;;  %517 = vmatprep.subr.mxu0 %v720_v5  ;;  %522 = vmatprep.subr.mxu1 %v720_v5  ;;  %vm219_vm2 = vcmask 31744   ;;  %v298_v14 = vld [vmem:[%s958_s2] sm:$0xf] }
  0x56   : > { %518 = vmatpush3.msk.msra.mxu0 %vm204_vm0, %v211_v6  ;;  %519 = vmatprep.mubr.msk.f32.mxu0 %vm721_vm1, %v720_v5  ;;  %v214_v8 = vand.u32 127, %v213_v7  ;;  %v216_v9 = vshrl.u32 %v213_v7, 7  ;;  %v722_v25 = vmov 839922192   ;;  %s512_s22 = sshll.u32 %s765_s16, 7  ;;  %s199_s27 = scalar_lea.vmem [#allocation7], %s499_s26 }
  0x57   : > { %v206_v3 = vsel %vm204_vm0, %v202_v1, 0.0  ;;  %524 = vmatprep.mubr.msk.f32.mxu1 %vm721_vm1, %v720_v5  ;;  %523 = vmatpush3.msk.msra.mxu1 %vm204_vm0, %v298_v14  ;;  %v387_v26 = vunpack.c.l.s4 %v722_v25  ;;  %s411_s30 = sshll.u32 %s199_s27, 4  ;;  %s912_s8 = scalar_lea.hbm %s959_s3, %s512_s22  ;;  %s914_s30 = int_to_ptr.vmem [resolvable:$true] %s411_s30 }
  0x58   : > { %v207_v4 = vadd.f32 %v206_v3, %v205_v2  ;;  %v217_v10 = vsub.s32 %v214_v8, %v216_v9  ;;  %v380_v20 = vsub.s32 0, %v216_v9  ;;  %s397_s9 = scalar_lea.sflag [#allocation4], %s885_s29  ;;  %s646_s10 = scalar_lea.vmem %s914_s30, 128 }
  0x59   : > { %v388_v27 = vunpack.c.0.s8 %v387_v26  ;;  %p647_p6 = scmp.ne.s32.totalorder %s914_s30, %s646_s10  ;;  %s723_s16 = smov [#allocation7]  }
  0x5a   : > { %208 = vadd.xlane.f32.xlu0 %v207_v4  ;;  %s650_s21 = sshll.u32 %s723_s16, 4  ;;  %s651_s21 = int_to_ptr.vmem [resolvable:$false] %s650_s21 }
  0x5b   : > { %v391_v28 = vsub.s32 %v388_v27, %v216_v9  ;;  %p648_p9 = pnand %p647_p6, %p836_p8  ;;  %s652_s24 = scalar_lea.vmem %s651_s21, 256 }
  0x5c   : > { %p653_p13 = scmp.lt.s32.totalorder %s914_s30, %s651_s21  ;;  %p654_p0 = scmp.lt.s32.totalorder %s652_s24, %s646_s10 }
  0x5d   : > { %p649_p12 = pneg %p648_p9 }
  0x5e   : > { %p655_p5 = por %p654_p0, %p653_p13 }
  0x60   : > { %p656_p10 = pnand %p655_p5, %p649_p12 }
  0xe7   : > { %v209_v11 = vpop.xlane.xlu0 %208 }
  0xe8   : > { %v210_v12 = vmul.f32 0.00390625, %v209_v11 }
  0xea   : > { %v218_v13 = vrot.slane %v210_v12, %v217_v10 }
  0xec   : > { %520 = vmatmul.mubr.msk.f32.vlgmr.msra.gmra.mrb[0].mxu0 %vm219_vm2, %v218_v13 }
 0x1bf   : > { %v291_v15 = vpop.f32.mrb[0].mxu0 }
 0x1c0   : > { %vm295_vm3 = vcmp.gt.f32.partialorder %v291_v15, 0.0  ;;  %v296_v16 = vmul.f32 0.01, %v291_v15  ;;  %v521_v17 = vpop.f32.mrb[1].mxu0 }
 0x1c2   : > { %v297_v18 = vsel %vm295_vm3, %v291_v15, %v296_v16 }
 0x1c3   : > { %525 = vmatmul.mubr.msk.f32.vlgmr.msra.gmra.mrb[0].mxu1 %vm219_vm2, %v297_v18 }
 0x296   : > { %v371_v19 = vpop.f32.mrb[0].mxu1 }
 0x297   : > { %vm375_vm4 = vcmp.gt.f32.partialorder %v371_v19, 0.0  ;;  %v376_v21 = vmul.f32 0.01, %v371_v19  ;;  %v526_v22 = vpop.f32.mrb[1].mxu1 }
 0x299   : > { %v377_v23 = vsel %vm375_vm4, %v371_v19, %v376_v21 }
 0x29a   : > { %v381_v24 = vrot.slane %v377_v23, %v380_v20 }
 0x29c   : > { %383 = vbcast.lane.b32.xlu0 %v381_v24, 256 }
 0x30e   : > { %v384_v29 = vpop.permute.xlu0 %383 }
 0x30f   : > { %v392_v30 = vrot.slane %v384_v29, %v391_v28 }
 0x311   : > { %v394_v31 = vmul.f32 %v392_v30, %v200_v0 }
 0x313   : > { %395 = vst [vmem:[%s199_s27] sm:$0xff] %v394_v31 }
 0x314   : > { %659 = shalt.err (!%p656_p10)
}
 0x315   : > { %s660_s25 = scalar_lea.hbm %s912_s8, 128  ;;  %s664_s26 = scalar_lea.hbm %s959_s3, 256 }
 0x316   : > { %p661_p1 = scmp.ne.s32.totalorder %s912_s8, %s660_s25  ;;  %p665_p3 = scmp.lt.u32.totalorder %s912_s8, %s959_s3 }
 0x317   : > { %p666_p11 = scmp.lt.u32.totalorder %s664_s26, %s660_s25  ;;  %p668_p6 = scmp.lt.u32.totalorder %s660_s25, %s912_s8 }
 0x318   : > { %p662_p2 = pnand %p661_p1, %p836_p8 }
 0x319   : > { %p667_p4 = por %p666_p11, %p665_p3 }
 0x31a   : > { %p663_p7 = pneg %p662_p2 }
 0x31b   : > { %p669_p9 = por %p668_p6, %p667_p4 }
 0x31d   : > { %p670_p12 = pnand %p669_p9, %p663_p7 }
 0x31f   : > { %673 = shalt.err (!%p670_p12)
}
 0x320   : > { %533 = dma.vmem_to_hbm [thread:$0]  (%p836_p8), %s914_s30, 128, %s912_s8, %s397_s9  }
 0x321 PF: > { %s423_s18 = sand.u32 1, %s704_s12   ;;  %p978_p13 = scmp.ne.s32.totalorder %s964_s19, 0 }
 0x322   : > { %p979_p0 = scmp.ge.s32.totalorder %s716_s15, 2  ;;  %s424_s20 = scalar_lea.sflag [#allocation4], %s423_s18 }
 0x324   : > { %p544_p5 = pnand %p979_p0, %p978_p13 }
 0x326   : > { %699 = dma.done.wait (!%p544_p5), %s424_s20, 128  }
 0x327   : > { %701 = vsyncadd (!%p544_p5), %s424_s20, 4294967168  ;;  %p17_p10 = scmp.ge.s32.totalorder %s792_s23, 4   ;;  %s980_s12 = smov %s708_s13 }
 0x328   : > { %s981_s13 = smov %s712_s14  ;;  %s982_s14 = smov %s828_s11 }
 0x329   : > { %s983_s15 = smov %s792_s23  ;;  %19 = sbr.rel (!%p17_p10) target bundleno = 6 (0x6), region = 81 }
 0x330   :  { %429 = vsyncpa [#allocation3], 1 }
 0x331   :  { %431 = vsyncpa [#allocation3 + $0x1], 1 }
 0x332   :  { %432 = vsyncpa [#allocation6], 1 }
 0x333   :  { %433 = vsyncpa [#allocation4], 1 }
 0x334   :  { %435 = vsyncpa [#allocation4 + $0x1], 1 }

</bundles_post_ra>
